<compile_context>
chip_gen: v7x
topology: tpu7x:2x2x1
jax: 0.10.0
libtpu: 0.0.40
codegen_flags: <defaults>
</compile_context>

<pallas_src>
import functools

import jax
import jax.numpy as jnp
from jax import lax
from jax.experimental import pallas as pl
from jax.experimental.pallas import tpu as pltpu


# ----------------------------------------------------------------------------
# Kernel 1: time-parallel input projection  P = x2d @ W_ih^T + (b_ih + b_hh)
# x2d is (S*B, I); grid is parallel over row blocks.
# ----------------------------------------------------------------------------
def _proj_kernel(x_ref, wih_ref, b_ref, p_ref):
    p_ref[...] = (
        jnp.dot(x_ref[...], wih_ref[...], preferred_element_type=jnp.float32)
        + b_ref[...]  # (1, H) broadcast once per (parallel) grid step
    ).astype(p_ref.dtype)


# ----------------------------------------------------------------------------
# Kernel 2: sequential recurrence over time, T_BLK timesteps per grid step.
#   h_t = tanh(P_t + h_{t-1} @ W_hh^T)
# Hidden state lives in a VMEM scratch that persists across grid steps.
# ----------------------------------------------------------------------------
def _recurrent_kernel(p_ref, whh_ref, out_ref, h_ref):
    tb = pl.program_id(0)

    @pl.when(tb == 0)
    def _():
        # hidden_init=None in the PyTorch module -> zeros.
        h_ref[...] = jnp.zeros_like(h_ref)

    t_blk = p_ref.shape[0]
    whh = whh_ref[...]  # hoisted: read the resident weight once per grid step

    def step(i, h):
        pre = p_ref[i] + jnp.dot(h, whh, preferred_element_type=jnp.float32)
        h_new = jnp.tanh(pre)
        out_ref[i] = h_new.astype(out_ref.dtype)
        return h_new

    # Unrolled inner loop amortizes the ~0.35us per-grid-step overhead over
    # T_BLK timesteps and keeps the carry in vregs.
    h_final = lax.fori_loop(0, t_blk, step, h_ref[...], unroll=True)
    h_ref[...] = h_final


# ----------------------------------------------------------------------------
# Wrapper
# ----------------------------------------------------------------------------
def rnn_forward(x, w_ih, w_hh, b_ih, b_hh, *, t_blk=8):
    """Pallas forward of a single-layer tanh RNN (batch_first=False).

    x:    (seq_len, batch, input_size) float32
    w_ih: (hidden, input_size), w_hh: (hidden, hidden)
    b_ih, b_hh: (hidden,)
    returns out: (seq_len, batch, hidden)
    """
    seq_len, batch, input_size = x.shape
    hidden = w_ih.shape[0]

    t_blk = min(t_blk, seq_len)
    assert seq_len % t_blk == 0, "seq_len must be divisible by t_blk (pad if needed)"

    # Glue (plain JAX, outside the kernels): pre-transpose weights, fuse biases,
    # flatten (S, B, I) -> (S*B, I) for the big projection matmul.
    wih_t = w_ih.T                      # (input_size, hidden)
    whh_t = w_hh.T                      # (hidden, hidden)
    bias = (b_ih + b_hh)[None, :]       # (1, hidden)
    x2d = x.reshape(seq_len * batch, input_size)
    rows_per_blk = t_blk * batch        # multiple of 8 when batch % 8 == 0

    # ---- 1) time-parallel projection: one MXU-friendly matmul ----------------
    p2d = pl.pallas_call(
        _proj_kernel,
        out_shape=jax.ShapeDtypeStruct((seq_len * batch, hidden), jnp.float32),
        grid_spec=pltpu.PrefetchScalarGridSpec(
            num_scalar_prefetch=0,
            grid=(seq_len // t_blk,),
            in_specs=[
                pl.BlockSpec((rows_per_blk, input_size), lambda t: (t, 0)),
                pl.BlockSpec((input_size, hidden), lambda t: (0, 0)),
                pl.BlockSpec((1, hidden), lambda t: (0, 0)),
            ],
            out_specs=pl.BlockSpec((rows_per_blk, hidden), lambda t: (t, 0)),
        ),
        compiler_params=pltpu.CompilerParams(
            dimension_semantics=("parallel",),  # time axis is independent here
        ),
    )(x2d, wih_t, bias)
    p = p2d.reshape(seq_len, batch, hidden)  # free, row-major-compatible reshape

    # ---- 2) sequential recurrence, T_BLK timesteps per grid step -------------
    out = pl.pallas_call(
        _recurrent_kernel,
        out_shape=jax.ShapeDtypeStruct((seq_len, batch, hidden), x.dtype),
        grid_spec=pltpu.PrefetchScalarGridSpec(
            num_scalar_prefetch=0,
            grid=(seq_len // t_blk,),
            in_specs=[
                pl.BlockSpec((t_blk, batch, hidden), lambda t: (t, 0, 0)),
                # Constant-index resident weight. For large H one would add
                # pipeline_mode=pl.Buffered(1) and/or a bf16 cast to halve the
                # VMEM footprint (v7x has only 64 MiB); at H=128 fp32 it is tiny.
                pl.BlockSpec((hidden, hidden), lambda t: (0, 0)),
            ],
            out_specs=pl.BlockSpec((t_blk, batch, hidden), lambda t: (t, 0, 0)),
            scratch_shapes=[pltpu.VMEM((batch, hidden), jnp.float32)],  # fp32 h
        ),
        compiler_params=pltpu.CompilerParams(
            dimension_semantics=("arbitrary",),  # true time recurrence
            vmem_limit_bytes=32 * 1024 * 1024,   # explicit, with headroom on v7x
        ),
    )(p, whh_t)
    return out


def rnn_reference(x, w_ih, w_hh, b_ih, b_hh):
    """Pure-JAX reference (lax.scan) matching torch.nn.RNN(tanh) forward."""
    _, batch, _ = x.shape
    hidden = w_ih.shape[0]
    h0 = jnp.zeros((batch, hidden), jnp.float32)

    def step(h, x_t):
        h_new = jnp.tanh(x_t @ w_ih.T + b_ih + h @ w_hh.T + b_hh)
        return h_new, h_new

    _, outs = lax.scan(step, h0, x)
    return outs


if __name__ == "__main__":
    # Small but hardware-friendly shapes: batch multiple of 8 (sublane),
    # hidden multiple of 128 (lane-dense output), two time blocks of 8 steps.
    seq_len, batch, input_size, hidden = 16, 8, 16, 128

    key = jax.random.PRNGKey(0)
    kx, k1, k2, k3, k4 = jax.random.split(key, 5)

    bound = 1.0 / jnp.sqrt(jnp.float32(hidden))
    x = jax.random.normal(kx, (seq_len, batch, input_size), jnp.float32)
    w_ih = jax.random.uniform(k1, (hidden, input_size), jnp.float32, -bound, bound)
    w_hh = jax.random.uniform(k2, (hidden, hidden), jnp.float32, -bound, bound)
    b_ih = jax.random.uniform(k3, (hidden,), jnp.float32, -bound, bound)
    b_hh = jax.random.uniform(k4, (hidden,), jnp.float32, -bound, bound)

    out = rnn_forward(x, w_ih, w_hh, b_ih, b_hh, t_blk=8)
    out = jax.block_until_ready(out)

    ref = rnn_reference(x, w_ih, w_hh, b_ih, b_hh)
    assert out.shape == (seq_len, batch, hidden)
    assert jnp.allclose(out, ref, atol=1e-4, rtol=1e-4), float(
        jnp.max(jnp.abs(out - ref))
    )

    print("KERNEL_OK")
</pallas_src>

<mosaic_0001>
module attributes {stable_mosaic.version = 11 : i64} {
  func.func @_proj_kernel(%arg0: i32, %arg1: memref<64x16xf32, #tpu.memory_space<vmem>>, %arg2: memref<16x128xf32, #tpu.memory_space<vmem>>, %arg3: memref<1x128xf32, #tpu.memory_space<vmem>>, %arg4: memref<64x128xf32, #tpu.memory_space<vmem>>) attributes {dimension_semantics = [#tpu.dimension_semantics<parallel>], iteration_bounds = array<i64: 2>, scalar_prefetch = 0 : i64, scratch_operands = 0 : i64, tpu.core_type = #tpu.core_type<tc>, window_params = [{transform_indices = @transform_0, window_bounds = array<i64: 64, 16>}, {pipeline_mode = #tpu.pipeline_mode<synchronous>, transform_indices = @transform_1, window_bounds = array<i64: 16, 128>}, {pipeline_mode = #tpu.pipeline_mode<synchronous>, transform_indices = @transform_2, window_bounds = array<i64: 1, 128>}, {transform_indices = @transform_3, window_bounds = array<i64: 64, 128>}]} {
    %c0 = arith.constant 0 : index
    %c0_0 = arith.constant 0 : index
    %0 = vector.load %arg1[%c0, %c0_0] : memref<64x16xf32, #tpu.memory_space<vmem>>, vector<64x16xf32>
    %c0_1 = arith.constant 0 : index
    %c0_2 = arith.constant 0 : index
    %1 = vector.load %arg2[%c0_1, %c0_2] : memref<16x128xf32, #tpu.memory_space<vmem>>, vector<16x128xf32>
    %cst = arith.constant dense<0.000000e+00> : vector<64x128xf32>
    %2 = tpu.matmul %0, %1, %cst {dimension_numbers = #tpu.dot_dimension_numbers<[1], [0], [0], [1], [0, 0, 1, 1], [], []>} : vector<64x16xf32>, vector<16x128xf32>, vector<64x128xf32> -> vector<64x128xf32>
    %c0_3 = arith.constant 0 : index
    %c0_4 = arith.constant 0 : index
    %3 = vector.load %arg3[%c0_3, %c0_4] : memref<1x128xf32, #tpu.memory_space<vmem>>, vector<1x128xf32>
    %4 = vector.broadcast %3 : vector<1x128xf32> to vector<64x128xf32>
    %5 = arith.addf %2, %4 : vector<64x128xf32>
    %c0_5 = arith.constant 0 : index
    %c0_6 = arith.constant 0 : index
    %6 = vector.load %arg4[%c0_5, %c0_6] : memref<64x128xf32, #tpu.memory_space<vmem>>, vector<64x128xf32>
    tpu.vector_store %arg4[%c0_5, %c0_6], %5 {strides = array<i32>} : memref<64x128xf32, #tpu.memory_space<vmem>>, vector<64x128xf32>,
    return
  }
  func.func @transform_0(%arg0: i32) -> (i32, i32) {
    %c0_i32 = arith.constant 0 : i32
    %c0_i32_0 = arith.constant 0 : i32
    return %arg0, %c0_i32 : i32, i32
  }
  func.func @transform_1(%arg0: i32) -> (i32, i32) {
    %c0_i32 = arith.constant 0 : i32
    %c0_i32_0 = arith.constant 0 : i32
    %c0_i32_1 = arith.constant 0 : i32
    return %c0_i32, %c0_i32_0 : i32, i32
  }
  func.func @transform_2(%arg0: i32) -> (i32, i32) {
    %c0_i32 = arith.constant 0 : i32
    %c0_i32_0 = arith.constant 0 : i32
    %c0_i32_1 = arith.constant 0 : i32
    return %c0_i32, %c0_i32_0 : i32, i32
  }
  func.func @transform_3(%arg0: i32) -> (i32, i32) {
    %c0_i32 = arith.constant 0 : i32
    %c0_i32_0 = arith.constant 0 : i32
    return %arg0, %c0_i32 : i32, i32
  }
}

</mosaic_0001>

<bundles_post_ra>
// kernel: tpu_custom_call.1
= control target key start
LH: loop header
LB: loop body
LE: loop exit
PB: predicated region body
PF: predicated region fallthrough
CT: control target
= control target key end

     0   :  { %8 = vsyncpa [#allocation3], 0  ;;  %s708_s0 = inlined_call_operand.vmem [shape: f32[128,16], index: 0, kind: input, shape index: {}]   ;;  %s709_s1 = inlined_call_operand.vmem [shape: f32[16,128], index: 1, kind: input, shape index: {}]   ;;  %s710_s2 = inlined_call_operand.vmem [shape: f32[1,128], index: 2, kind: input, shape index: {}]   ;;  %s711_s3 = inlined_call_operand.hbm [shape: f32[128,128], index: 3, kind: output, shape index: {}]  }
   0x1   :  { %10 = vsyncpa [#allocation3 + $0x1], 0  ;;  %s585_s12 = smov 0   ;;  %s587_s13 = smov 0  }
   0x2   :  { %s589_s14 = smov 0   ;;  %s591_s15 = smov 0  }
   0x3 LB: > { %s606_s16 = sadd.s32 4294967295, %s560_s15   ;;  %s403_s17 = sadd.s32 4294967294, %s560_s15   ;;  %s560_s15 = sphi %s591_s15, %s717_s15   ;;  %s556_s14 = sphi %s589_s14, %s716_s14   ;;  %s552_s13 = sphi %s587_s13, %s715_s13   ;;  %s548_s12 = sphi %s585_s12, %s714_s12  }
   0x4   : > { %s610_s18 = sadd.s32 1, %s560_s15   ;;  %s91_s19 = sadd.s32 1, %s556_s14 }
   0x5   : > { %s88_s20 = ssub.s32 %s560_s15, %s610_s18  ;;  %p101_p0 = scmp.ne.s32.totalorder %s556_s14, %s552_s13 }
   0x6   : > { %p89_p1 = scmp.eq.s32.totalorder %s88_s20, 0  ;;  %p102_p2 = scmp.eq.s32.totalorder %s606_s16, 1 }
   0x7   : > { %p107_p3 = scmp.ne.s32.totalorder %s552_s13, %s548_s12  ;;  %p108_p4 = scmp.eq.s32.totalorder %s403_s17, 1 }
   0x8   : > { %s621_s21 = scalar_select %p89_p1, %s556_s14, %s91_s19  }
   0x9   : > { %p623_p5 = por %p102_p2, %p101_p0  ;;  %p627_p6 = por %p108_p4, %p107_p3 }
   0xa   : > { %p406_p7 = scmp.ge.s32.totalorder %s560_s15, 1  ;;  %p141_p8 = scmp.lt.s32.totalorder %s560_s15, 3 }
   0xc   : > { %p142_p9 = pnand %p406_p7, %p141_p8 }
   0xd   : > { %v180_v0 = vld [vmem:[%s709_s1] sm:$0xff] (!%p142_p9)  ;;  %v181_v1 = vld [vmem:[%s709_s1 + $0x8] sm:$0xff] (!%p142_p9)  ;;  %s408_s28 = sshll.u32 (!%p142_p9), %s606_s16, 3  ;;  %vm189_vm0 = vcmask (!%p142_p9), 130048   ;;  %s162_s6 = sand.u32 (!%p142_p9), 1, %s552_s13  }
   0xe   : > { %145 = sbr.rel (%p142_p9) target bundleno = 261 (0x105), region = 32  ;;  %v451_v2 = vpack.c.bf16 (!%p142_p9), %v181_v1, %v180_v0  ;;  %p166_p10 = scmp.lt.s32.totalorder (!%p142_p9), %s408_s28, 15  ;;  %v410_v11 = vld [vmem:[%s710_s2] ss:$0 sm:$0xff] (!%p142_p9) }
   0xf   : > { %s407_s7 = sshll.u32 (!%p142_p9), %s162_s6, 6  ;;  %s424_s10 = sshll.u32 (!%p142_p9), %s606_s16, 10 }
  0x10   : > { %452 = vmatprep.subr.bf16.mxu0 (!%p142_p9), %v451_v2  ;;  %455 = vmatprep.subr.bf16.mxu1 (!%p142_p9), %v451_v2  ;;  %s164_s11 = scalar_lea.vmem (!%p142_p9), [#allocation2], %s407_s7  ;;  %s661_s24 = scalar_lea.hbm (!%p142_p9), %s711_s3, %s424_s10 }
  0x11   : > { %454 = vmatpush3.bf16.msra.mxu0 (!%p142_p9), %v451_v2  ;;  %456 = vmatpush3.bf16.msra.mxu1 (!%p142_p9), %v451_v2  ;;  %s341_s17 = sshll.u32 (!%p142_p9), %s164_s11, 4  ;;  %s667_s16 = scalar_lea.sflag (!%p142_p9), [#allocation3], %s162_s6  ;;  %s663_s17 = int_to_ptr.vmem [resolvable:$true] %s341_s17 }
  0x12   : > { %s498_s25 = scalar_lea.vmem (!%p142_p9), %s663_s17, 1024  ;;  %s562_s26 = smov (!%p142_p9), [#allocation2]  }
  0x13   : > { %p499_p11 = scmp.ne.s32.totalorder (!%p142_p9), %s663_s17, %s498_s25  ;;  %s502_s27 = sshll.u32 (!%p142_p9), %s562_s26, 4  ;;  %s503_s27 = int_to_ptr.vmem [resolvable:$false] %s502_s27 }
  0x14   : > { %p505_p0 = scmp.lt.s32.totalorder (!%p142_p9), %s663_s17, %s503_s27 }
  0x15   : > { %s719_s28 = smov (!%p166_p10, %s408_s28), 15  ;;  %p500_p12 = pnand %p499_p11, %p623_p5 }
  0x16   : > { %s409_s29 = sshll.u32 %s719_s28, 3  ;;  %s504_s28 = scalar_lea.vmem %s503_s27, 2048 }
  0x17   : > { %s169_s5 = scalar_lea.vmem %s708_s0, %s409_s29  ;;  %p501_p13 = pneg %p500_p12 }
  0x18   : > { %v172_v3 = vld [vmem:[%s169_s5] sm:$0xff]  ;;  %v173_v5 = vld [vmem:[%s169_s5 + $0x8] sm:$0xff]  ;;  %v174_v7 = vld [vmem:[%s169_s5 + $0x10] sm:$0xff]  ;;  %p506_p1 = scmp.lt.s32.totalorder %s504_s28, %s498_s25 }
  0x19   : > { %v176_v4 = vld [vmem:[%s169_s5 + $0x20] sm:$0xff]  ;;  %439 = vmatprep.mubr.msk.f32.mxu0 %vm189_vm0, %v172_v3  ;;  %v177_v6 = vld [vmem:[%s169_s5 + $0x28] sm:$0xff]  ;;  %v178_v8 = vld [vmem:[%s169_s5 + $0x30] sm:$0xff] }
  0x1a   : > { %445 = vmatprep.mubr.msk.f32.mxu1 %vm189_vm0, %v176_v4  ;;  %440 = vmatmul.mubr.msk.f32.vlgmr.msra.gmra.mrb[0].mxu0 %vm189_vm0, %v173_v5  ;;  %v175_v9 = vld [vmem:[%s169_s5 + $0x18] sm:$0xff]  ;;  %p507_p2 = por %p506_p1, %p505_p0 }
  0x1b   : > { %446 = vmatmul.mubr.msk.f32.vlgmr.msra.gmra.mrb[0].mxu1 %vm189_vm0, %v177_v6  ;;  %442 = vmatprep.mubr.msk.f32.mxu0 %vm189_vm0, %v174_v7  ;;  %v179_v10 = vld [vmem:[%s169_s5 + $0x38] sm:$0xff] }
  0x1c   : > { %448 = vmatprep.mubr.msk.f32.mxu1 %vm189_vm0, %v178_v8  ;;  %p508_p3 = pnand %p507_p2, %p501_p13 }
  0x1e   : > { %443 = vmatmul.mubr.msk.f32.gmra.mrb[2].mxu0 %vm189_vm0, %v175_v9 }
  0x1f   : > { %449 = vmatmul.mubr.msk.f32.gmra.mrb[2].mxu1 %vm189_vm0, %v179_v10 }
  0xed   : > { %v441_v12 = vpop.f32.mrb[0].mxu0 }
  0xee   : > { %v447_v13 = vpop.f32.mrb[0].mxu1  ;;  %v286_v14 = vadd.f32 %v441_v12, %v410_v11  ;;  %v280_v16 = vpop.f32.mrb[1].mxu0 }
  0xef   : > { %v306_v15 = vadd.f32 %v447_v13, %v410_v11  ;;  %v300_v17 = vpop.f32.mrb[1].mxu1  ;;  %v281_v18 = vadd.f32 %v410_v11, %v280_v16 }
  0xf0   : > { %v301_v19 = vadd.f32 %v410_v11, %v300_v17  ;;  %320 = vst [vmem:[%s164_s11 + $0x8] sm:$0xff] %v286_v14 }
  0xf1   : > { %324 = vst [vmem:[%s164_s11 + $0x28] sm:$0xff] %v306_v15  ;;  %319 = vst [vmem:[%s164_s11] sm:$0xff] %v281_v18  ;;  %v444_v20 = vpop.f32.mrb[2].mxu0 }
  0xf2   : > { %323 = vst [vmem:[%s164_s11 + $0x20] sm:$0xff] %v301_v19  ;;  %v450_v21 = vpop.f32.mrb[2].mxu1  ;;  %v296_v22 = vadd.f32 %v444_v20, %v410_v11  ;;  %v290_v24 = vpop.f32.mrb[3].mxu0 }
  0xf3   : > { %v316_v23 = vadd.f32 %v450_v21, %v410_v11  ;;  %v310_v25 = vpop.f32.mrb[3].mxu1  ;;  %v291_v26 = vadd.f32 %v410_v11, %v290_v24 }
  0xf4   : > { %v311_v27 = vadd.f32 %v410_v11, %v310_v25  ;;  %322 = vst [vmem:[%s164_s11 + $0x18] sm:$0xff] %v296_v22 }
  0xf5   : > { %326 = vst [vmem:[%s164_s11 + $0x38] sm:$0xff] %v316_v23  ;;  %321 = vst [vmem:[%s164_s11 + $0x10] sm:$0xff] %v291_v26 }
  0xf6   : > { %325 = vst [vmem:[%s164_s11 + $0x30] sm:$0xff] %v311_v27 }
  0xf7   : > { %511 = shalt.err (!%p508_p3)
}
  0xf8   : > { %s512_s29 = scalar_lea.hbm %s661_s24, 1024  ;;  %s516_s5 = scalar_lea.hbm %s711_s3, 2048 }
  0xf9   : > { %p513_p4 = scmp.ne.s32.totalorder %s661_s24, %s512_s29  ;;  %p517_p9 = scmp.lt.u32.totalorder %s661_s24, %s711_s3 }
  0xfa   : > { %p518_p10 = scmp.lt.u32.totalorder %s516_s5, %s512_s29  ;;  %p520_p12 = scmp.lt.u32.totalorder %s512_s29, %s661_s24 }
  0xfb   : > { %p514_p7 = pnand %p513_p4, %p623_p5 }
  0xfc   : > { %p519_p11 = por %p518_p10, %p517_p9 }
  0xfd   : > { %p515_p8 = pneg %p514_p7 }
  0xfe   : > { %p521_p13 = por %p520_p12, %p519_p11 }
 0x100   : > { %p522_p0 = pnand %p521_p13, %p515_p8 }
 0x102   : > { %525 = shalt.err (!%p522_p0)
}
 0x103   : > { %s563_s8 = smov 128   ;;  %s564_s9 = smov 8  }
 0x104   : > { %457 = dma.vmem_to_hbm [thread:$0]  (%p623_p5), %s663_s17, 1024, %s661_s24, %s667_s16, %s563_s8, %s563_s8, %s564_s9  }
 0x105 PF: > { %p463_p1 = scmp.ge.s32.totalorder %s560_s15, 2  ;;  %s356_s10 = sand.u32 1, %s548_s12  }
 0x106   : > { %s357_s11 = scalar_lea.sflag [#allocation3], %s356_s10 }
 0x107   : > { %p460_p2 = pnand %p463_p1, %p627_p6 }
 0x109   : > { %543 = dma.done.wait (!%p460_p2), %s357_s11, 1024  }
 0x10a   : > { %545 = vsyncadd (!%p460_p2), %s357_s11, 4294966272  ;;  %p13_p3 = scmp.ge.s32.totalorder %s610_s18, 4   ;;  %s714_s12 = smov %s552_s13 }
 0x10b   : > { %s715_s13 = smov %s556_s14  ;;  %s716_s14 = smov %s621_s21 }
 0x10c   : > { %s717_s15 = smov %s610_s18  ;;  %15 = sbr.rel (!%p13_p3) target bundleno = 3 (0x3), region = 67 }
 0x113   :  { %362 = vsyncpa [#allocation3], 1 }
 0x114   :  { %364 = vsyncpa [#allocation3 + $0x1], 1 }

</bundles_post_ra>
